<compile_context>
chip_gen: v6e
topology: v6e:2x2x1
jax: 0.10.0
libtpu: 0.0.40
codegen_flags: <defaults>
</compile_context>

<pallas_src>
import functools

import jax
import jax.numpy as jnp
from jax.experimental import pallas as pl
from jax.experimental.pallas import tpu as pltpu

LANE = 128  # padded feature width for every layer


# ---------------------------------------------------------------------------
# Fused Pallas kernel: full forward pass, everything resident in VMEM
# ---------------------------------------------------------------------------
def fused_forward_kernel(a_ref, x_ref, w_ref, b_ref, o_ref):
    # w_ref: (5, 128, 128) = [w_self0, w_neigh0, w_self1, w_neigh1, w_cls]
    # b_ref: (8, 128)      = rows 0/1/2 are b0 / b1 / b_cls (rest zero-pad)
    a = a_ref[...]                                                   # (N, N)
    h = x_ref[...]                                                   # (N, Fp)

    # --- SAGE layer 0: two dots + add (no concat intermediate) ---
    ah = jnp.dot(a, h, preferred_element_type=jnp.float32)           # (N, Fp)
    h = jnp.maximum(
        jnp.dot(h, w_ref[0], preferred_element_type=jnp.float32)
        + jnp.dot(ah, w_ref[1], preferred_element_type=jnp.float32)
        + b_ref[0:1, :], 0.0)                                        # (N, Fp)

    # --- SAGE layer 1 ---
    ah = jnp.dot(a, h, preferred_element_type=jnp.float32)
    h = jnp.maximum(
        jnp.dot(h, w_ref[2], preferred_element_type=jnp.float32)
        + jnp.dot(ah, w_ref[3], preferred_element_type=jnp.float32)
        + b_ref[1:2, :], 0.0)                                        # (N, Fp)

    # --- classifier head (lane-dense padded output, sliced in the wrapper) ---
    o_ref[...] = (jnp.dot(h, w_ref[4], preferred_element_type=jnp.float32)
                  + b_ref[2:3, :]).astype(o_ref.dtype)               # (N, Fp)


# ---------------------------------------------------------------------------
# One-time parameter packing (hoisted out of the per-call path)
# ---------------------------------------------------------------------------
def _pad_to(x, shape):
    return jnp.pad(x, [(0, t - s) for s, t in zip(x.shape, shape)])


def pack_params(params):
    """Pad/stack all weights & biases ONCE.  Returns (w_stack, b_stack, out_dim)."""
    out_dim = params["w_cls"].shape[1]
    w_stack = jnp.stack([
        _pad_to(params["w_self0"], (LANE, LANE)),
        _pad_to(params["w_neigh0"], (LANE, LANE)),
        _pad_to(params["w_self1"], (LANE, LANE)),
        _pad_to(params["w_neigh1"], (LANE, LANE)),
        _pad_to(params["w_cls"], (LANE, LANE)),
    ]).astype(jnp.float32)                                           # (5,128,128)

    b_stack = jnp.zeros((8, LANE), jnp.float32)
    b_stack = b_stack.at[0, :params["b0"].shape[1]].set(params["b0"][0])
    b_stack = b_stack.at[1, :params["b1"].shape[1]].set(params["b1"][0])
    b_stack = b_stack.at[2, :params["b_cls"].shape[1]].set(params["b_cls"][0])
    return w_stack, b_stack, out_dim


# ---------------------------------------------------------------------------
# Jitted forward: pad features, one pallas_call, slice real output columns
# ---------------------------------------------------------------------------
@functools.partial(jax.jit, static_argnames=("out_dim",))
def surrogate_embedding_forward(adj, x, w_stack, b_stack, *, out_dim):
    n, in_feats = x.shape
    fp = LANE
    x_p = jnp.pad(x, ((0, 0), (0, fp - in_feats)))                   # (N, 128)

    inputs = (adj, x_p, w_stack, b_stack)

    # Advisory cost estimate so XLA schedules the small custom call sensibly.
    flops = (2 * 2 * n * n * fp          # two A @ H
             + 4 * 2 * n * fp * fp       # four SAGE dots
             + 2 * n * fp * fp)          # classifier
    bytes_accessed = 4 * (sum(int(a.size) for a in inputs) + n * fp)

    vmem_spec = lambda: pl.BlockSpec(memory_space=pltpu.MemorySpace.VMEM)

    out_p = pl.pallas_call(
        fused_forward_kernel,
        out_shape=jax.ShapeDtypeStruct((n, fp), jnp.float32),
        in_specs=[vmem_spec() for _ in inputs],
        out_specs=vmem_spec(),
        cost_estimate=pl.CostEstimate(
            flops=flops, transcendentals=0, bytes_accessed=bytes_accessed),
    )(*inputs)

    return out_p[:, :out_dim]


# ---------------------------------------------------------------------------
# Pure-JAX reference for correctness check
# ---------------------------------------------------------------------------
def reference_forward(adj, x, p):
    h = x
    for ws, wn, b in [(p["w_self0"], p["w_neigh0"], p["b0"]),
                      (p["w_self1"], p["w_neigh1"], p["b1"])]:
        h = jnp.maximum(h @ ws + (adj @ h) @ wn + b, 0.0)
    return h @ p["w_cls"] + p["b_cls"]


if __name__ == "__main__":
    # Small, module-consistent shapes.
    N = 64          # number of graph nodes
    IN_FEATS = 16   # input node-feature dim
    H_FEATS = 32    # base_model.h_feats
    OUT_DIM = 8     # output_dim (target embedding dim)

    key = jax.random.PRNGKey(0)
    kx, ka, *kw = jax.random.split(key, 10)

    # Node features.
    x = jax.random.normal(kx, (N, IN_FEATS), dtype=jnp.float32)

    # Deterministic random graph -> dense row-normalized (mean-aggregation) adjacency.
    a_raw = (jax.random.uniform(ka, (N, N)) < 0.1).astype(jnp.float32)
    a_sym = jnp.maximum(a_raw, a_raw.T)
    a_sym = jnp.maximum(a_sym, jnp.eye(N, dtype=jnp.float32))  # self-loop avoids 0-degree
    deg = jnp.sum(a_sym, axis=1, keepdims=True)
    adj = a_sym / deg                                           # (N, N) row-normalized

    # Deterministic parameter init (synthetic weights; (F_in, F_out) layout).
    def init(k, shape, scale=0.1):
        return scale * jax.random.normal(k, shape, dtype=jnp.float32)

    params = {
        "w_self0":  init(kw[0], (IN_FEATS, H_FEATS)),
        "w_neigh0": init(kw[1], (IN_FEATS, H_FEATS)),
        "b0":       init(kw[2], (1, H_FEATS)),
        "w_self1":  init(kw[3], (H_FEATS, H_FEATS)),
        "w_neigh1": init(kw[4], (H_FEATS, H_FEATS)),
        "b1":       init(kw[5], (1, H_FEATS)),
        "w_cls":    init(kw[6], (H_FEATS, OUT_DIM)),
        "b_cls":    init(kw[7], (1, OUT_DIM)),
    }

    # One-time packing (hoisted out of the per-call path).
    w_stack, b_stack, out_dim = pack_params(params)
    w_stack = jax.block_until_ready(w_stack)
    b_stack = jax.block_until_ready(b_stack)

    out = surrogate_embedding_forward(adj, x, w_stack, b_stack, out_dim=out_dim)
    out = jax.block_until_ready(out)

    ref = reference_forward(adj, x, params)
    assert out.shape == (N, OUT_DIM)
    assert jnp.allclose(out, ref, atol=1e-4, rtol=1e-4), "mismatch vs reference"

    print("KERNEL_OK")
</pallas_src>

<mosaic_0001>
module attributes {stable_mosaic.version = 11 : i64} {
  func.func @fused_forward_kernel(%arg0: memref<64x64xf32, #tpu.memory_space<vmem>>, %arg1: memref<64x128xf32, #tpu.memory_space<vmem>>, %arg2: memref<5x128x128xf32, #tpu.memory_space<vmem>>, %arg3: memref<8x128xf32, #tpu.memory_space<vmem>>, %arg4: memref<64x128xf32, #tpu.memory_space<vmem>>) attributes {dimension_semantics = [], scalar_prefetch = 0 : i64, scratch_operands = 0 : i64, tpu.core_type = #tpu.core_type<tc>} {
    %c0 = arith.constant 0 : index
    %c0_0 = arith.constant 0 : index
    %0 = vector.load %arg0[%c0, %c0_0] : memref<64x64xf32, #tpu.memory_space<vmem>>, vector<64x64xf32>
    %c0_1 = arith.constant 0 : index
    %c0_2 = arith.constant 0 : index
    %1 = vector.load %arg1[%c0_1, %c0_2] : memref<64x128xf32, #tpu.memory_space<vmem>>, vector<64x128xf32>
    %cst = arith.constant dense<0.000000e+00> : vector<64x128xf32>
    %2 = tpu.matmul %0, %1, %cst {dimension_numbers = #tpu.dot_dimension_numbers<[1], [0], [0], [1], [0, 0, 1, 1], [], []>} : vector<64x64xf32>, vector<64x128xf32>, vector<64x128xf32> -> vector<64x128xf32>
    %c0_3 = arith.constant 0 : index
    %c0_4 = arith.constant 0 : index
    %c0_5 = arith.constant 0 : index
    %3 = vector.load %arg2[%c0_3, %c0_4, %c0_5] : memref<5x128x128xf32, #tpu.memory_space<vmem>>, vector<1x128x128xf32>
    %4 = vector.shape_cast %3 : vector<1x128x128xf32> to vector<128x128xf32>
    %cst_6 = arith.constant dense<0.000000e+00> : vector<64x128xf32>
    %5 = tpu.matmul %1, %4, %cst_6 {dimension_numbers = #tpu.dot_dimension_numbers<[1], [0], [0], [1], [0, 0, 1, 1], [], []>} : vector<64x128xf32>, vector<128x128xf32>, vector<64x128xf32> -> vector<64x128xf32>
    %c1 = arith.constant 1 : index
    %c0_7 = arith.constant 0 : index
    %c0_8 = arith.constant 0 : index
    %6 = vector.load %arg2[%c1, %c0_7, %c0_8] : memref<5x128x128xf32, #tpu.memory_space<vmem>>, vector<1x128x128xf32>
    %7 = vector.shape_cast %6 : vector<1x128x128xf32> to vector<128x128xf32>
    %cst_9 = arith.constant dense<0.000000e+00> : vector<64x128xf32>
    %8 = tpu.matmul %2, %7, %cst_9 {dimension_numbers = #tpu.dot_dimension_numbers<[1], [0], [0], [1], [0, 0, 1, 1], [], []>} : vector<64x128xf32>, vector<128x128xf32>, vector<64x128xf32> -> vector<64x128xf32>
    %9 = arith.addf %5, %8 : vector<64x128xf32>
    %c0_10 = arith.constant 0 : index
    %c0_11 = arith.constant 0 : index
    %10 = vector.load %arg3[%c0_10, %c0_11] : memref<8x128xf32, #tpu.memory_space<vmem>>, vector<1x128xf32>
    %11 = vector.broadcast %10 : vector<1x128xf32> to vector<64x128xf32>
    %12 = arith.addf %9, %11 : vector<64x128xf32>
    %cst_12 = arith.constant 0.000000e+00 : f32
    %13 = vector.broadcast %cst_12 : f32 to vector<64x128xf32>
    %14 = arith.maximumf %12, %13 : vector<64x128xf32>
    %cst_13 = arith.constant dense<0.000000e+00> : vector<64x128xf32>
    %15 = tpu.matmul %0, %14, %cst_13 {dimension_numbers = #tpu.dot_dimension_numbers<[1], [0], [0], [1], [0, 0, 1, 1], [], []>} : vector<64x64xf32>, vector<64x128xf32>, vector<64x128xf32> -> vector<64x128xf32>
    %c2 = arith.constant 2 : index
    %c0_14 = arith.constant 0 : index
    %c0_15 = arith.constant 0 : index
    %16 = vector.load %arg2[%c2, %c0_14, %c0_15] : memref<5x128x128xf32, #tpu.memory_space<vmem>>, vector<1x128x128xf32>
    %17 = vector.shape_cast %16 : vector<1x128x128xf32> to vector<128x128xf32>
    %cst_16 = arith.constant dense<0.000000e+00> : vector<64x128xf32>
    %18 = tpu.matmul %14, %17, %cst_16 {dimension_numbers = #tpu.dot_dimension_numbers<[1], [0], [0], [1], [0, 0, 1, 1], [], []>} : vector<64x128xf32>, vector<128x128xf32>, vector<64x128xf32> -> vector<64x128xf32>
    %c3 = arith.constant 3 : index
    %c0_17 = arith.constant 0 : index
    %c0_18 = arith.constant 0 : index
    %19 = vector.load %arg2[%c3, %c0_17, %c0_18] : memref<5x128x128xf32, #tpu.memory_space<vmem>>, vector<1x128x128xf32>
    %20 = vector.shape_cast %19 : vector<1x128x128xf32> to vector<128x128xf32>
    %cst_19 = arith.constant dense<0.000000e+00> : vector<64x128xf32>
    %21 = tpu.matmul %15, %20, %cst_19 {dimension_numbers = #tpu.dot_dimension_numbers<[1], [0], [0], [1], [0, 0, 1, 1], [], []>} : vector<64x128xf32>, vector<128x128xf32>, vector<64x128xf32> -> vector<64x128xf32>
    %22 = arith.addf %18, %21 : vector<64x128xf32>
    %c1_20 = arith.constant 1 : index
    %c0_21 = arith.constant 0 : index
    %23 = vector.load %arg3[%c1_20, %c0_21] : memref<8x128xf32, #tpu.memory_space<vmem>>, vector<1x128xf32>
    %24 = vector.broadcast %23 : vector<1x128xf32> to vector<64x128xf32>
    %25 = arith.addf %22, %24 : vector<64x128xf32>
    %cst_22 = arith.constant 0.000000e+00 : f32
    %26 = vector.broadcast %cst_22 : f32 to vector<64x128xf32>
    %27 = arith.maximumf %25, %26 : vector<64x128xf32>
    %c4 = arith.constant 4 : index
    %c0_23 = arith.constant 0 : index
    %c0_24 = arith.constant 0 : index
    %28 = vector.load %arg2[%c4, %c0_23, %c0_24] : memref<5x128x128xf32, #tpu.memory_space<vmem>>, vector<1x128x128xf32>
    %29 = vector.shape_cast %28 : vector<1x128x128xf32> to vector<128x128xf32>
    %cst_25 = arith.constant dense<0.000000e+00> : vector<64x128xf32>
    %30 = tpu.matmul %27, %29, %cst_25 {dimension_numbers = #tpu.dot_dimension_numbers<[1], [0], [0], [1], [0, 0, 1, 1], [], []>} : vector<64x128xf32>, vector<128x128xf32>, vector<64x128xf32> -> vector<64x128xf32>
    %c2_26 = arith.constant 2 : index
    %c0_27 = arith.constant 0 : index
    %31 = vector.load %arg3[%c2_26, %c0_27] : memref<8x128xf32, #tpu.memory_space<vmem>>, vector<1x128xf32>
    %32 = vector.broadcast %31 : vector<1x128xf32> to vector<64x128xf32>
    %33 = arith.addf %30, %32 : vector<64x128xf32>
    %c0_28 = arith.constant 0 : index
    %c0_29 = arith.constant 0 : index
    %34 = vector.load %arg4[%c0_28, %c0_29] : memref<64x128xf32, #tpu.memory_space<vmem>>, vector<64x128xf32>
    tpu.vector_store %arg4[%c0_28, %c0_29], %33 {strides = array<i32>} : memref<64x128xf32, #tpu.memory_space<vmem>>, vector<64x128xf32>,
    return
  }
}

</mosaic_0001>

<bundles_post_ra>
// kernel: surrogate_embedding_forward.1
= control target key start
LH: loop header
LB: loop body
LE: loop exit
PB: predicated region body
PF: predicated region fallthrough
CT: control target
= control target key end

     0   :  { %9 = vsyncpa [#allocation3], 0  ;;  %s1423_s15 = smov [#allocation2]   ;;  %s1653_s0 = inlined_call_operand.vmem [shape: f32[64,64], index: 0, kind: input, shape index: {}]   ;;  %s1654_s1 = inlined_call_operand.vmem [shape: f32[64,128], index: 1, kind: input, shape index: {}]   ;;  %s1655_s2 = inlined_call_operand.hbm [shape: f32[5,128,128], index: 2, kind: input, shape index: {}]   ;;  %s1656_s3 = inlined_call_operand.vmem [shape: f32[8,128], index: 3, kind: input, shape index: {}]   ;;  %s1657_s4 = inlined_call_operand.vmem [shape: f32[64,128], index: 4, kind: output, shape index: {}]  }
   0x1   :  { %s19_s16 = sshll.u32 %s1423_s15, 4  ;;  %s20_s16 = int_to_ptr.vmem [resolvable:$true] %s19_s16 }
   0x2   :  { %s1409_s17 = scalar_lea.vmem %s20_s16, 10240  ;;  %p1414_p1 = scmp.lt.s32.totalorder %s20_s16, %s20_s16 }
   0x3   :  { %p1410_p0 = scmp.ne.s32.totalorder %s20_s16, %s1409_s17  ;;  %p1415_p2 = scmp.lt.s32.totalorder %s1409_s17, %s1409_s17 }
   0x5   :  { %p1416_p3 = por %p1415_p2, %p1414_p1 }
   0x7   :  { %p1417_p4 = pnand %p1416_p3, %p1410_p0 }
   0x9   :  { %1420 = shalt.err (!%p1417_p4)
}
   0xa   :  { %s1424_s18 = smov 128   ;;  %s1425_s19 = smov 8  }
   0xb   :  { %25 = dma.hbm_to_vmem [thread:$0]  %s1655_s2, 10240, %s20_s16, [#allocation3], %s1424_s18, %s1424_s18, %s1425_s19  }
   0xc   :  { %1421 = dma.done.wait [#allocation3], 10240  }
   0xd   :  { %1422 = vsyncadd [#allocation3], 4294957056  ;;  %v1457_v0 = vld [vmem:[%s1654_s1 + $0x38] sm:$0xff]  ;;  %v1462_v1 = vld [vmem:[%s1654_s1 + $0x30] sm:$0xff]  ;;  %vm47_vm0 = vcmask 523264  }
   0xe   :  { %1122 = vmatprep.subr.mxu1 %v1457_v0  ;;  %v1469_v2 = vld [vmem:[%s1654_s1 + $0x28] sm:$0xff]  ;;  %v1474_v3 = vld [vmem:[%s1653_s0] sm:$0xff]  ;;  %v192_v6 = vld [vmem:[#allocation2 + $0x78] sm:$0xff] }
   0xf   :  { %1123 = vmatpush3.msra.mxu1 %v1457_v0  ;;  %v39_v4 = vld [vmem:[%s1654_s1] sm:$0xff]  ;;  %1138 = vmatprep.mubr.msk.f32.mxu1 %vm47_vm0, %v1474_v3  ;;  %v1493_v7 = vld [vmem:[%s1654_s1 + $0x18] sm:$0xff]  ;;  %v191_v8 = vld [vmem:[#allocation2 + $0x70] sm:$0xff] }
  0x10   :  { %1124 = vmatprep.subr.mxu1 %v1462_v1  ;;  %v1486_v5 = vld [vmem:[%s1654_s1 + $0x20] sm:$0xff]  ;;  %1226 = vmatprep.mubr.f32.mxu0 %v39_v4  ;;  %v190_v9 = vld [vmem:[#allocation2 + $0x68] sm:$0xff]  ;;  %v1500_v10 = vld [vmem:[%s1654_s1 + $0x10] sm:$0xff] }
  0x11   :  { %1125 = vmatpush3.msra.mxu1 %v1462_v1  ;;  %1194 = vmatprep.subr.mxu0 %v192_v6  ;;  %v189_v11 = vld [vmem:[#allocation2 + $0x60] sm:$0xff]  ;;  %v1507_v12 = vld [vmem:[%s1654_s1 + $0x8] sm:$0xff]  ;;  %v188_v13 = vld [vmem:[#allocation2 + $0x58] sm:$0xff] }
  0x12   :  { %1126 = vmatprep.subr.mxu1 %v1469_v2  ;;  %1195 = vmatpush3.msra.mxu0 %v192_v6  ;;  %v187_v14 = vld [vmem:[#allocation2 + $0x50] sm:$0xff]  ;;  %v1516_v15 = vld [vmem:[%s1653_s0 + $0x8] sm:$0xff]  ;;  %v209_v16 = vld [vmem:[#allocation2 + $0xf8] sm:$0xff] }
  0x13   :  { %1127 = vmatpush3.msra.mxu1 %v1469_v2  ;;  %1196 = vmatprep.subr.mxu0 %v191_v8  ;;  %v1521_v17 = vld [vmem:[%s1653_s0 + $0x10] sm:$0xff]  ;;  %v186_v19 = vld [vmem:[#allocation2 + $0x48] sm:$0xff]  ;;  %v1530_v20 = vld [vmem:[%s1653_s0 + $0x18] sm:$0xff] }
  0x14   :  { %1128 = vmatprep.subr.mxu1 %v1486_v5  ;;  %1197 = vmatpush3.msra.mxu0 %v191_v8  ;;  %v208_v18 = vld [vmem:[#allocation2 + $0xf0] sm:$0xff]  ;;  %v207_v21 = vld [vmem:[#allocation2 + $0xe8] sm:$0xff]  ;;  %v1535_v22 = vld [vmem:[%s1653_s0 + $0x20] sm:$0xff] }
  0x15   :  { %1129 = vmatpush3.msra.mxu1 %v1486_v5  ;;  %1198 = vmatprep.subr.mxu0 %v190_v9  ;;  %v206_v23 = vld [vmem:[#allocation2 + $0xe0] sm:$0xff]  ;;  %v1544_v25 = vld [vmem:[%s1653_s0 + $0x28] sm:$0xff]  ;;  %v205_v26 = vld [vmem:[#allocation2 + $0xd8] sm:$0xff] }
  0x16   :  { %1130 = vmatprep.subr.mxu1 %v1493_v7  ;;  %1199 = vmatpush3.msra.mxu0 %v190_v9  ;;  %v185_v24 = vld [vmem:[#allocation2 + $0x40] sm:$0xff]  ;;  %v1549_v27 = vld [vmem:[%s1653_s0 + $0x30] sm:$0xff]  ;;  %v184_v29 = vld [vmem:[#allocation2 + $0x38] sm:$0xff] }
  0x17   :  { %1131 = vmatpush3.msra.mxu1 %v1493_v7  ;;  %1200 = vmatprep.subr.mxu0 %v189_v11  ;;  %v204_v28 = vld [vmem:[#allocation2 + $0xd0] sm:$0xff]  ;;  %v1558_v30 = vld [vmem:[%s1653_s0 + $0x38] sm:$0xff]  ;;  %v203_v31 = vld [vmem:[#allocation2 + $0xc8] sm:$0xff] }
  0x18   :  { %1132 = vmatprep.subr.mxu1 %v1500_v10  ;;  %1201 = vmatpush3.msra.mxu0 %v189_v11  ;;  %v202_v32 = vld [vmem:[#allocation2 + $0xc0] sm:$0xff]  ;;  %v183_v33 = vld [vmem:[#allocation2 + $0x30] sm:$0xff]  ;;  %v201_v34 = vld [vmem:[#allocation2 + $0xb8] sm:$0xff] }
  0x19   :  { %1133 = vmatpush3.msra.mxu1 %v1500_v10  ;;  %1202 = vmatprep.subr.mxu0 %v188_v13  ;;  %v182_v35 = vld [vmem:[#allocation2 + $0x28] sm:$0xff]  ;;  %v200_v36 = vld [vmem:[#allocation2 + $0xb0] sm:$0xff]  ;;  %v181_v37 = vld [vmem:[#allocation2 + $0x20] sm:$0xff] }
  0x1a   :  { %1134 = vmatprep.subr.mxu1 %v1507_v12  ;;  %1203 = vmatpush3.msra.mxu0 %v188_v13  ;;  %v199_v38 = vld [vmem:[#allocation2 + $0xa8] sm:$0xff]  ;;  %v180_v39 = vld [vmem:[#allocation2 + $0x18] sm:$0xff]  ;;  %v198_v40 = vld [vmem:[#allocation2 + $0xa0] sm:$0xff] }
  0x1b   :  { %1135 = vmatpush3.msra.mxu1 %v1507_v12  ;;  %1204 = vmatprep.subr.mxu0 %v187_v14  ;;  %v179_v41 = vld [vmem:[#allocation2 + $0x10] sm:$0xff]  ;;  %v197_v42 = vld [vmem:[#allocation2 + $0x98] sm:$0xff]  ;;  %v178_v43 = vld [vmem:[#allocation2 + $0x8] sm:$0xff] }
  0x1c   :  { %1136 = vmatprep.subr.mxu1 %v39_v4  ;;  %1205 = vmatpush3.msra.mxu0 %v187_v14  ;;  %v196_v44 = vld [vmem:[#allocation2 + $0x90] sm:$0xff]  ;;  %v195_v45 = vld [vmem:[#allocation2 + $0x88] sm:$0xff]  ;;  %v177_v46 = vld [vmem:[#allocation2] sm:$0xff] }
  0x1d   :  { %1137 = vmatpush3.msra.mxu1 %v39_v4  ;;  %1206 = vmatprep.subr.mxu0 %v186_v19  ;;  %v194_v47 = vld [vmem:[#allocation2 + $0x80] sm:$0xff]  ;;  %v579_v56 = vld [vmem:[#allocation2 + $0x1f8] sm:$0xff]  ;;  %v578_v57 = vld [vmem:[#allocation2 + $0x1f0] sm:$0xff] }
  0x1e   :  { %1139 = vmatmul.mubr.msk.f32.vlgmr.msra.gmra.mxu1 %vm47_vm0, %v1516_v15  ;;  %1150 = vmatprep.subr.mxu1 %v209_v16  ;;  %v577_v58 = vld [vmem:[#allocation2 + $0x1e8] sm:$0xff]  ;;  %v576_v59 = vld [vmem:[#allocation2 + $0x1e0] sm:$0xff]  ;;  %v575_v60 = vld [vmem:[#allocation2 + $0x1d8] sm:$0xff] }
  0x1f   :  { %1141 = vmatprep.mubr.msk.f32.mxu1 %vm47_vm0, %v1521_v17  ;;  %1151 = vmatpush3.msra.mxu1 %v209_v16  ;;  %v574_v61 = vld [vmem:[#allocation2 + $0x1d0] sm:$0xff]  ;;  %v573_v62 = vld [vmem:[#allocation2 + $0x1c8] sm:$0xff]  ;;  %v572_v63 = vld [vmem:[#allocation2 + $0x1c0] sm:$0xff] }
  0x20   :  { %1152 = vmatprep.subr.mxu1 %v208_v18  ;;  %1207 = vmatpush3.msra.mxu0 %v186_v19  ;;  %v567_v4 = vld [vmem:[#allocation2 + $0x198] sm:$0xff] }
  0x21   :  { %1153 = vmatpush3.msra.mxu1 %v208_v18  ;;  %1208 = vmatprep.subr.mxu0 %v185_v24 }
  0x22   :  { %1142 = vmatmul.mubr.msk.f32.gmra.mxu1 %vm47_vm0, %v1530_v20  ;;  %1154 = vmatprep.subr.mxu1 %v207_v21 }
  0x23   :  { %1144 = vmatprep.mubr.msk.f32.mxu1 %vm47_vm0, %v1535_v22  ;;  %1155 = vmatpush3.msra.mxu1 %v207_v21 }
  0x24   :  { %1156 = vmatprep.subr.mxu1 %v206_v23  ;;  %1209 = vmatpush3.msra.mxu0 %v185_v24 }
  0x25   :  { %1157 = vmatpush3.msra.mxu1 %v206_v23  ;;  %1210 = vmatprep.subr.mxu0 %v184_v29 }
  0x26   :  { %1145 = vmatmul.mubr.msk.f32.gmra.mxu1 %vm47_vm0, %v1544_v25  ;;  %1158 = vmatprep.subr.mxu1 %v205_v26 }
  0x27   :  { %1147 = vmatprep.mubr.msk.f32.mxu1 %vm47_vm0, %v1549_v27  ;;  %1159 = vmatpush3.msra.mxu1 %v205_v26 }
  0x28   :  { %1160 = vmatprep.subr.mxu1 %v204_v28  ;;  %1211 = vmatpush3.msra.mxu0 %v184_v29 }
  0x29   :  { %1161 = vmatpush3.msra.mxu1 %v204_v28  ;;  %1212 = vmatprep.subr.mxu0 %v183_v33  ;;  %v959_v28 = vld [vmem:[%s1656_s3] ss:$0 sm:$0xff] }
  0x2a   :  { %1148 = vmatmul.mubr.msk.f32.gmra.mxu1 %vm47_vm0, %v1558_v30  ;;  %1162 = vmatprep.subr.mxu1 %v203_v31 }
  0x2b   :  { %1163 = vmatpush3.msra.mxu1 %v203_v31  ;;  %1213 = vmatpush3.msra.mxu0 %v183_v33 }
  0x2c   :  { %1164 = vmatprep.subr.mxu1 %v202_v32  ;;  %1214 = vmatprep.subr.mxu0 %v182_v35 }
  0x2d   :  { %1165 = vmatpush3.msra.mxu1 %v202_v32  ;;  %1215 = vmatpush3.msra.mxu0 %v182_v35 }
  0x2e   :  { %1166 = vmatprep.subr.mxu1 %v201_v34  ;;  %1216 = vmatprep.subr.mxu0 %v181_v37 }
  0x2f   :  { %1167 = vmatpush3.msra.mxu1 %v201_v34  ;;  %1217 = vmatpush3.msra.mxu0 %v181_v37 }
  0x30   :  { %1168 = vmatprep.subr.mxu1 %v200_v36  ;;  %1218 = vmatprep.subr.mxu0 %v180_v39 }
  0x31   :  { %1169 = vmatpush3.msra.mxu1 %v200_v36  ;;  %1219 = vmatpush3.msra.mxu0 %v180_v39 }
  0x32   :  { %1170 = vmatprep.subr.mxu1 %v199_v38  ;;  %1220 = vmatprep.subr.mxu0 %v179_v41 }
  0x33   :  { %1171 = vmatpush3.msra.mxu1 %v199_v38  ;;  %1221 = vmatpush3.msra.mxu0 %v179_v41 }
  0x34   :  { %1172 = vmatprep.subr.mxu1 %v198_v40  ;;  %1222 = vmatprep.subr.mxu0 %v178_v43 }
  0x35   :  { %1173 = vmatpush3.msra.mxu1 %v198_v40  ;;  %1223 = vmatpush3.msra.mxu0 %v178_v43 }
  0x36   :  { %1174 = vmatprep.subr.mxu1 %v197_v42  ;;  %1224 = vmatprep.subr.mxu0 %v177_v46 }
  0x37   :  { %1175 = vmatpush3.msra.mxu1 %v197_v42  ;;  %1225 = vmatpush3.msra.mxu0 %v177_v46 }
  0x38   :  { %1176 = vmatprep.subr.mxu1 %v196_v44  ;;  %1227 = vmatmul.mubr.f32.vlgmr.msra.gmra.mxu0 %v1507_v12 }
  0x39   :  { %1177 = vmatpush3.msra.mxu1 %v196_v44  ;;  %1229 = vmatprep.mubr.f32.mxu0 %v1500_v10 }
  0x3a   :  { %1178 = vmatprep.subr.mxu1 %v195_v45  ;;  %1266 = vmatprep.subr.mxu0 %v579_v56 }
  0x3b   :  { %1179 = vmatpush3.msra.mxu1 %v195_v45  ;;  %1267 = vmatpush3.msra.mxu0 %v579_v56  ;;  %v560_v56 = vld [vmem:[#allocation2 + $0x168] sm:$0xff] }
  0x3c   :  { %1180 = vmatprep.subr.mxu1 %v194_v47  ;;  %1230 = vmatmul.mubr.f32.gmra.mxu0 %v1493_v7 }
  0x3d   :  { %1181 = vmatpush3.msra.mxu1 %v194_v47  ;;  %1232 = vmatprep.mubr.f32.mxu0 %v1486_v5  ;;  %v566_v5 = vld [vmem:[#allocation2 + $0x190] sm:$0xff] }
  0x3e   :  { %1268 = vmatprep.subr.mxu0 %v578_v57 }
  0x3f   :  { %1269 = vmatpush3.msra.mxu0 %v578_v57  ;;  %v559_v57 = vld [vmem:[#allocation2 + $0x160] sm:$0xff] }
  0x40   :  { %1233 = vmatmul.mubr.f32.gmra.mxu0 %v1469_v2  ;;  %1270 = vmatprep.subr.mxu0 %v577_v58  ;;  %v569_v2 = vld [vmem:[#allocation2 + $0x1a8] sm:$0xff] }
  0x41   :  { %1235 = vmatprep.mubr.f32.mxu0 %v1462_v1  ;;  %1271 = vmatpush3.msra.mxu0 %v577_v58  ;;  %v570_v1 = vld [vmem:[#allocation2 + $0x1b0] sm:$0xff]  ;;  %v558_v58 = vld [vmem:[#allocation2 + $0x158] sm:$0xff] }
  0x42   :  { %1272 = vmatprep.subr.mxu0 %v576_v59 }
  0x43   :  { %1273 = vmatpush3.msra.mxu0 %v576_v59  ;;  %v553_v59 = vld [vmem:[#allocation2 + $0x130] sm:$0xff] }
  0x44   :  { %1236 = vmatmul.mubr.f32.gmra.mxu0 %v1457_v0  ;;  %1274 = vmatprep.subr.mxu0 %v575_v60  ;;  %v571_v0 = vld [vmem:[#allocation2 + $0x1b8] sm:$0xff] }
  0x45   :  { %1275 = vmatpush3.msra.mxu0 %v575_v60  ;;  %v550_v60 = vld [vmem:[#allocation2 + $0x118] sm:$0xff] }
  0x46   :  { %1276 = vmatprep.subr.mxu0 %v574_v61 }
  0x47   :  { %1277 = vmatpush3.msra.mxu0 %v574_v61  ;;  %v549_v61 = vld [vmem:[#allocation2 + $0x110] sm:$0xff] }
  0x48   :  { %1278 = vmatprep.subr.mxu0 %v573_v62 }
  0x49   :  { %1279 = vmatpush3.msra.mxu0 %v573_v62  ;;  %v547_v62 = vld [vmem:[#allocation2 + $0x100] sm:$0xff] }
  0x4a   :  { %1280 = vmatprep.subr.mxu0 %v572_v63 }
  0x4b   :  { %1281 = vmatpush3.msra.mxu0 %v572_v63  ;;  %v565_v63 = vld [vmem:[#allocation2 + $0x188] sm:$0xff] }
  0x4c   :  { %1282 = vmatprep.subr.mxu0 %v571_v0 }
  0x4d   :  { %1283 = vmatpush3.msra.mxu0 %v571_v0  ;;  %v564_v0 = vld [vmem:[#allocation2 + $0x180] sm:$0xff] }
  0x4e   :  { %1284 = vmatprep.subr.mxu0 %v570_v1 }
  0x4f   :  { %1285 = vmatpush3.msra.mxu0 %v570_v1  ;;  %v827_v1 = vld [vmem:[#allocation2 + $0x278] sm:$0xff] }
  0x50   :  { %1286 = vmatprep.subr.mxu0 %v569_v2 }
  0x51   :  { %1287 = vmatpush3.msra.mxu0 %v569_v2 }
  0xde   :  { %v1140_v48 = vpop.f32.mrf.mxu1 }
  0xe0   :  { %v138_v49 = vpop.f32.mrf.mxu1 }
  0xe1   :  { %1182 = vmatprep.mubr.f32.mxu1 %v138_v49 }
  0xe2   :  { %v1143_v50 = vpop.f32.mrf.mxu1  ;;  %1183 = vmatmul.mubr.f32.vlgmr.msra.gmra.mxu1 %v1140_v48 }
  0xe4   :  { %v148_v51 = vpop.f32.mrf.mxu1 }
  0xe5   :  { %1185 = vmatprep.mubr.f32.mxu1 %v148_v51 }
  0xe6   :  { %v1146_v52 = vpop.f32.mrf.mxu1  ;;  %1186 = vmatmul.mubr.f32.gmra.mxu1 %v1143_v50 }
  0xe8   :  { %v158_v53 = vpop.f32.mrf.mxu1 }
  0xe9   :  { %1188 = vmatprep.mubr.f32.mxu1 %v158_v53 }
  0xea   :  { %v1149_v54 = vpop.f32.mrf.mxu1  ;;  %1189 = vmatmul.mubr.f32.gmra.mxu1 %v1146_v52 }
  0xec   :  { %v168_v55 = vpop.f32.mrf.mxu1 }
  0xed   :  { %1191 = vmatprep.mubr.f32.mxu1 %v168_v55  ;;  %v561_v55 = vld [vmem:[#allocation2 + $0x170] sm:$0xff] }
  0xee   :  { %1192 = vmatmul.mubr.f32.gmra.mxu1 %v1149_v54  ;;  %v562_v54 = vld [vmem:[#allocation2 + $0x178] sm:$0xff] }
  0xef   :  { %1254 = vmatprep.mubr.msk.f32.mxu1 %vm47_vm0, %v1474_v3  ;;  %v568_v3 = vld [vmem:[#allocation2 + $0x1a0] sm:$0xff] }
  0xf0   :  { %1288 = vmatprep.subr.mxu0 %v568_v3 }
  0xf1   :  { %1289 = vmatpush3.msra.mxu0 %v568_v3 }
  0xf2   :  { %1290 = vmatprep.subr.mxu0 %v567_v4 }
  0xf3   :  { %1291 = vmatpush3.msra.mxu0 %v567_v4  ;;  %v826_v4 = vld [vmem:[#allocation2 + $0x270] sm:$0xff] }
  0xf4   :  { %1292 = vmatprep.subr.mxu0 %v566_v5 }
  0xf5   :  { %1293 = vmatpush3.msra.mxu0 %v566_v5 }
  0xf6   :  { %1294 = vmatprep.subr.mxu0 %v565_v63 }
  0xf7   :  { %1295 = vmatpush3.msra.mxu0 %v565_v63 }
  0xf8   :  { %v1228_v6 = vpop.f32.mrf.mxu0  ;;  %1296 = vmatprep.subr.mxu0 %v564_v0 }
  0xf9   :  { %1297 = vmatpush3.msra.mxu0 %v564_v0 }
  0xfa   :  { %v381_v7 = vpop.f32.mrf.mxu0  ;;  %1354 = vmatprep.subr.mxu0 %v827_v1 }
  0xfc   :  { %v1231_v8 = vpop.f32.mrf.mxu0 }
  0xfe   :  { %v391_v9 = vpop.f32.mrf.mxu0 }
 0x100   :  { %v1234_v12 = vpop.f32.mrf.mxu0 }
 0x102   :  { %v401_v16 = vpop.f32.mrf.mxu0 }
 0x104   :  { %v1237_v21 = vpop.f32.mrf.mxu0 }
 0x106   :  { %v411_v29 = vpop.f32.mrf.mxu0 }
 0x1a2   :  { %v1184_v10 = vpop.f32.mrf.mxu1 }
 0x1a3   :  { %v387_v42 = vadd.f32 %v1228_v6, %v1184_v10  ;;  %v825_v6 = vld [vmem:[#allocation2 + $0x268] sm:$0xff]  ;;  %v823_v10 = vld [vmem:[#allocation2 + $0x258] sm:$0xff] }
 0x1a4   :  { %v276_v11 = vpop.f32.mrf.mxu1 }
 0x1a5   :  { %v382_v45 = vadd.f32 %v381_v7, %v276_v11  ;;  %v426_v48 = vadd.f32 %v959_v28, %v387_v42 }
 0x1a6   :  { %v1187_v13 = vpop.f32.mrf.mxu1 }
 0x1a7   :  { %v397_v35 = vadd.f32 %v1231_v8, %v1187_v13  ;;  %v425_v50 = vadd.f32 %v959_v28, %v382_v45  ;;  %v1596_v52 = vmax.f32 %v426_v48, 0.0  ;;  %v824_v8 = vld [vmem:[#allocation2 + $0x260] sm:$0xff] }
 0x1a8   :  { %v286_v14 = vpop.f32.mrf.mxu1 }
 0x1a9   :  { %v392_v39 = vadd.f32 %v391_v9, %v286_v14  ;;  %v428_v43 = vadd.f32 %v959_v28, %v397_v35  ;;  %v433_v53 = vmax.f32 %v425_v50, 0.0  ;;  %v821_v14 = vld [vmem:[#allocation2 + $0x248] sm:$0xff] }
 0x1aa   :  { %v1190_v18 = vpop.f32.mrf.mxu1 }
 0x1ab   :  { %v407_v24 = vadd.f32 %v1234_v12, %v1190_v18  ;;  %v427_v46 = vadd.f32 %v959_v28, %v392_v39  ;;  %v1588_v49 = vmax.f32 %v428_v43, 0.0  ;;  %v822_v12 = vld [vmem:[#allocation2 + $0x250] sm:$0xff]  ;;  %v820_v18 = vld [vmem:[#allocation2 + $0x240] sm:$0xff] }
 0x1ac   :  { %v296_v19 = vpop.f32.mrf.mxu1 }
 0x1ad   :  { %v402_v32 = vadd.f32 %v401_v16, %v296_v19  ;;  %v430_v36 = vadd.f32 %v959_v28, %v407_v24  ;;  %v1592_v51 = vmax.f32 %v427_v46, 0.0  ;;  %v819_v19 = vld [vmem:[#allocation2 + $0x238] sm:$0xff]  ;;  %v816_v24 = vld [vmem:[#allocation2 + $0x220] sm:$0xff] }
 0x1ae   :  { %v1193_v23 = vpop.f32.mrf.mxu1 }
 0x1af   :  { %v417_v26 = vadd.f32 %v1237_v21, %v1193_v23  ;;  %v429_v40 = vadd.f32 %v959_v28, %v402_v32  ;;  %v1580_v44 = vmax.f32 %v430_v36, 0.0  ;;  %v818_v21 = vld [vmem:[#allocation2 + $0x230] sm:$0xff]  ;;  %v817_v23 = vld [vmem:[#allocation2 + $0x228] sm:$0xff] }
 0x1b0   :  { %v306_v31 = vpop.f32.mrf.mxu1 }
 0x1b1   :  { %v432_v33 = vadd.f32 %v959_v28, %v417_v26  ;;  %v412_v34 = vadd.f32 %v411_v29, %v306_v31  ;;  %v1584_v47 = vmax.f32 %v429_v40, 0.0  ;;  %v815_v26 = vld [vmem:[#allocation2 + $0x218] sm:$0xff]  ;;  %v813_v29 = vld [vmem:[#allocation2 + $0x208] sm:$0xff]  ;;  %v812_v31 = vld [vmem:[#allocation2 + $0x200] sm:$0xff] }
 0x1b3   :  { %v1574_v37 = vmax.f32 %v432_v33, 0.0  ;;  %v431_v38 = vadd.f32 %v959_v28, %v412_v34  ;;  %v814_v28 = vld [vmem:[#allocation2 + $0x210] sm:$0xff] }
 0x1b5   :  { %v1576_v41 = vmax.f32 %v431_v38, 0.0  ;;  %1238 = vmatprep.subr.mxu1 %v1574_v37  ;;  %v968_v38 = vld [vmem:[%s1656_s3 + $0x1] ss:$0 sm:$0xff] }
 0x1b6   :  { %1239 = vmatpush3.msra.mxu1 %v1574_v37 }
 0x1b7   :  { %1240 = vmatprep.subr.mxu1 %v1576_v41 }
 0x1b8   :  { %1241 = vmatpush3.msra.mxu1 %v1576_v41 }
 0x1b9   :  { %1242 = vmatprep.subr.mxu1 %v1580_v44 }
 0x1ba   :  { %1243 = vmatpush3.msra.mxu1 %v1580_v44 }
 0x1bb   :  { %1244 = vmatprep.subr.mxu1 %v1584_v47 }
 0x1bc   :  { %1245 = vmatpush3.msra.mxu1 %v1584_v47 }
 0x1bd   :  { %1246 = vmatprep.subr.mxu1 %v1588_v49 }
 0x1be   :  { %1247 = vmatpush3.msra.mxu1 %v1588_v49 }
 0x1bf   :  { %1248 = vmatprep.subr.mxu1 %v1592_v51 }
 0x1c0   :  { %1249 = vmatpush3.msra.mxu1 %v1592_v51 }
 0x1c1   :  { %1250 = vmatprep.subr.mxu1 %v1596_v52 }
 0x1c2   :  { %1251 = vmatpush3.msra.mxu1 %v1596_v52 }
 0x1c3   :  { %1252 = vmatprep.subr.mxu1 %v433_v53 }
 0x1c4   :  { %1253 = vmatpush3.msra.mxu1 %v433_v53 }
 0x1c5   :  { %1255 = vmatmul.mubr.msk.f32.vlgmr.msra.gmra.mxu1 %vm47_vm0, %v1516_v15  ;;  %1310 = vmatprep.subr.mxu1 %v562_v54  ;;  %v557_v15 = vld [vmem:[#allocation2 + $0x150] sm:$0xff] }
 0x1c6   :  { %1311 = vmatpush3.msra.mxu1 %v562_v54  ;;  %1257 = vmatprep.mubr.msk.f32.mxu1 %vm47_vm0, %v1521_v17  ;;  %v556_v17 = vld [vmem:[#allocation2 + $0x148] sm:$0xff] }
 0x1c7   :  { %1312 = vmatprep.subr.mxu1 %v561_v55 }
 0x1c8   :  { %1313 = vmatpush3.msra.mxu1 %v561_v55 }
 0x1c9   :  { %1258 = vmatmul.mubr.msk.f32.gmra.mxu1 %vm47_vm0, %v1530_v20  ;;  %1314 = vmatprep.subr.mxu1 %v560_v56  ;;  %v555_v20 = vld [vmem:[#allocation2 + $0x140] sm:$0xff] }
 0x1ca   :  { %1315 = vmatpush3.msra.mxu1 %v560_v56  ;;  %1260 = vmatprep.mubr.msk.f32.mxu1 %vm47_vm0, %v1535_v22  ;;  %v554_v22 = vld [vmem:[#allocation2 + $0x138] sm:$0xff] }
 0x1cb   :  { %1316 = vmatprep.subr.mxu1 %v559_v57 }
 0x1cc   :  { %1317 = vmatpush3.msra.mxu1 %v559_v57 }
 0x1cd   :  { %1261 = vmatmul.mubr.msk.f32.gmra.mxu1 %vm47_vm0, %v1544_v25  ;;  %1318 = vmatprep.subr.mxu1 %v558_v58  ;;  %v552_v25 = vld [vmem:[#allocation2 + $0x128] sm:$0xff] }
 0x1ce   :  { %1319 = vmatpush3.msra.mxu1 %v558_v58  ;;  %1263 = vmatprep.mubr.msk.f32.mxu1 %vm47_vm0, %v1549_v27  ;;  %v551_v27 = vld [vmem:[#allocation2 + $0x120] sm:$0xff] }
 0x1cf   :  { %1320 = vmatprep.subr.mxu1 %v557_v15 }
 0x1d0   :  { %1321 = vmatpush3.msra.mxu1 %v557_v15 }
 0x1d1   :  { %1264 = vmatmul.mubr.msk.f32.gmra.mxu1 %vm47_vm0, %v1558_v30  ;;  %1322 = vmatprep.subr.mxu1 %v556_v17  ;;  %v548_v30 = vld [vmem:[#allocation2 + $0x108] sm:$0xff] }
 0x1d2   :  { %1323 = vmatpush3.msra.mxu1 %v556_v17  ;;  %1342 = vmatprep.mubr.f32.mxu1 %v433_v53 }
 0x1d3   :  { %1324 = vmatprep.subr.mxu1 %v555_v20 }
 0x1d4   :  { %1325 = vmatpush3.msra.mxu1 %v555_v20 }
 0x1d5   :  { %1326 = vmatprep.subr.mxu1 %v554_v22 }
 0x1d6   :  { %1327 = vmatpush3.msra.mxu1 %v554_v22 }
 0x1d7   :  { %1328 = vmatprep.subr.mxu1 %v553_v59 }
 0x1d8   :  { %1329 = vmatpush3.msra.mxu1 %v553_v59 }
 0x1d9   :  { %1330 = vmatprep.subr.mxu1 %v552_v25 }
 0x1da   :  { %1331 = vmatpush3.msra.mxu1 %v552_v25 }
 0x1db   :  { %1332 = vmatprep.subr.mxu1 %v551_v27 }
 0x1dc   :  { %1333 = vmatpush3.msra.mxu1 %v551_v27 }
 0x1dd   :  { %1334 = vmatprep.subr.mxu1 %v550_v60 }
 0x1de   :  { %1335 = vmatpush3.msra.mxu1 %v550_v60 }
 0x1df   :  { %1336 = vmatprep.subr.mxu1 %v549_v61 }
 0x1e0   :  { %1337 = vmatpush3.msra.mxu1 %v549_v61 }
 0x1e1   :  { %1338 = vmatprep.subr.mxu1 %v548_v30 }
 0x1e2   :  { %1339 = vmatpush3.msra.mxu1 %v548_v30 }
 0x1e3   :  { %1340 = vmatprep.subr.mxu1 %v547_v62 }
 0x1e4   :  { %1341 = vmatpush3.msra.mxu1 %v547_v62 }
 0x1e5   :  { %1343 = vmatmul.mubr.f32.vlgmr.msra.gmra.mxu1 %v1596_v52 }
 0x1e6   :  { %1345 = vmatprep.mubr.f32.mxu1 %v1592_v51 }
 0x1e9   :  { %1346 = vmatmul.mubr.f32.gmra.mxu1 %v1588_v49 }
 0x1ea   :  { %1348 = vmatprep.mubr.f32.mxu1 %v1584_v47 }
 0x1ed   :  { %1349 = vmatmul.mubr.f32.gmra.mxu1 %v1580_v44 }
 0x1ee   :  { %1351 = vmatprep.mubr.f32.mxu1 %v1576_v41 }
 0x1f1   :  { %1352 = vmatmul.mubr.f32.gmra.mxu1 %v1574_v37 }
 0x285   :  { %v1256_v2 = vpop.f32.mrf.mxu1 }
 0x287   :  { %v507_v3 = vpop.f32.mrf.mxu1 }
 0x288   :  { %1298 = vmatprep.mubr.f32.mxu0 %v507_v3 }
 0x289   :  { %v1259_v5 = vpop.f32.mrf.mxu1  ;;  %1299 = vmatmul.mubr.f32.vlgmr.msra.gmra.mxu0 %v1256_v2  ;;  %v969_v2 = vld [vmem:[%s1656_s3 + $0x2] ss:$0 sm:$0xff] }
 0x28a   :  { %1355 = vmatpush3.msra.mxu0 %v827_v1 }
 0x28b   :  { %v517_v7 = vpop.f32.mrf.mxu1  ;;  %1356 = vmatprep.subr.mxu0 %v826_v4 }
 0x28c   :  { %1301 = vmatprep.mubr.f32.mxu0 %v517_v7  ;;  %1357 = vmatpush3.msra.mxu0 %v826_v4 }
 0x28d   :  { %v1262_v9 = vpop.f32.mrf.mxu1  ;;  %1302 = vmatmul.mubr.f32.gmra.mxu0 %v1259_v5  ;;  %1358 = vmatprep.subr.mxu0 %v825_v6 }
 0x28e   :  { %1359 = vmatpush3.msra.mxu0 %v825_v6 }
 0x28f   :  { %v527_v11 = vpop.f32.mrf.mxu1  ;;  %1360 = vmatprep.subr.mxu0 %v824_v8 }
 0x290   :  { %1304 = vmatprep.mubr.f32.mxu0 %v527_v11  ;;  %1361 = vmatpush3.msra.mxu0 %v824_v8 }
 0x291   :  { %v1265_v13 = vpop.f32.mrf.mxu1  ;;  %1305 = vmatmul.mubr.f32.gmra.mxu0 %v1262_v9  ;;  %1362 = vmatprep.subr.mxu0 %v823_v10 }
 0x292   :  { %1363 = vmatpush3.msra.mxu0 %v823_v10 }
 0x293   :  { %v537_v16 = vpop.f32.mrf.mxu1  ;;  %1364 = vmatprep.subr.mxu0 %v822_v12 }
 0x294   :  { %1307 = vmatprep.mubr.f32.mxu0 %v537_v16  ;;  %1365 = vmatpush3.msra.mxu0 %v822_v12 }
 0x295   :  { %1308 = vmatmul.mubr.f32.gmra.mxu0 %v1265_v13  ;;  %1366 = vmatprep.subr.mxu0 %v821_v14 }
 0x296   :  { %1367 = vmatpush3.msra.mxu0 %v821_v14 }
 0x297   :  { %1368 = vmatprep.subr.mxu0 %v820_v18 }
 0x298   :  { %1369 = vmatpush3.msra.mxu0 %v820_v18 }
 0x299   :  { %1370 = vmatprep.subr.mxu0 %v819_v19 }
 0x29a   :  { %1371 = vmatpush3.msra.mxu0 %v819_v19 }
 0x29b   :  { %1372 = vmatprep.subr.mxu0 %v818_v21 }
 0x29c   :  { %1373 = vmatpush3.msra.mxu0 %v818_v21 }
 0x29d   :  { %1374 = vmatprep.subr.mxu0 %v817_v23 }
 0x29e   :  { %1375 = vmatpush3.msra.mxu0 %v817_v23 }
 0x29f   :  { %1376 = vmatprep.subr.mxu0 %v816_v24 }
 0x2a0   :  { %1377 = vmatpush3.msra.mxu0 %v816_v24 }
 0x2a1   :  { %1378 = vmatprep.subr.mxu0 %v815_v26 }
 0x2a2   :  { %1379 = vmatpush3.msra.mxu0 %v815_v26 }
 0x2a3   :  { %1380 = vmatprep.subr.mxu0 %v814_v28 }
 0x2a4   :  { %1381 = vmatpush3.msra.mxu0 %v814_v28 }
 0x2a5   :  { %1382 = vmatprep.subr.mxu0 %v813_v29  ;;  %v1344_v32 = vpop.f32.mrf.mxu1 }
 0x2a6   :  { %1383 = vmatpush3.msra.mxu0 %v813_v29 }
 0x2a7   :  { %1384 = vmatprep.subr.mxu0 %v812_v31  ;;  %v751_v33 = vpop.f32.mrf.mxu1 }
 0x2a8   :  { %1385 = vmatpush3.msra.mxu0 %v812_v31 }
 0x2a9   :  { %v1347_v34 = vpop.f32.mrf.mxu1 }
 0x2ab   :  { %v761_v35 = vpop.f32.mrf.mxu1 }
 0x2ad   :  { %v1350_v39 = vpop.f32.mrf.mxu1 }
 0x2af   :  { %v771_v46 = vpop.f32.mrf.mxu1 }
 0x2b1   :  { %v1353_v55 = vpop.f32.mrf.mxu1 }
 0x2b3   :  { %v781_v25 = vpop.f32.mrf.mxu1 }
 0x349   :  { %v1300_v36 = vpop.f32.mrf.mxu0 }
 0x34a   :  { %v757_v37 = vadd.f32 %v1344_v32, %v1300_v36 }
 0x34b   :  { %v646_v40 = vpop.f32.mrf.mxu0 }
 0x34c   :  { %v752_v41 = vadd.f32 %v751_v33, %v646_v40  ;;  %v796_v42 = vadd.f32 %v968_v38, %v757_v37 }
 0x34d   :  { %v1303_v43 = vpop.f32.mrf.mxu0 }
 0x34e   :  { %v795_v44 = vadd.f32 %v968_v38, %v752_v41  ;;  %v767_v45 = vadd.f32 %v1347_v34, %v1303_v43  ;;  %v804_v50 = vmax.f32 %v796_v42, 0.0 }
 0x34f   :  { %v656_v47 = vpop.f32.mrf.mxu0 }
 0x350   :  { %v803_v48 = vmax.f32 %v795_v44, 0.0  ;;  %v762_v49 = vadd.f32 %v761_v35, %v656_v47  ;;  %v798_v51 = vadd.f32 %v968_v38, %v767_v45 }
 0x351   :  { %v1306_v52 = vpop.f32.mrf.mxu0 }
 0x352   :  { %v797_v53 = vadd.f32 %v968_v38, %v762_v49  ;;  %v777_v54 = vadd.f32 %v1350_v39, %v1306_v52  ;;  %1386 = vmatprep.mubr.f32.mxu0 %v803_v48  ;;  %v806_v15 = vmax.f32 %v798_v51, 0.0 }
 0x353   :  { %v666_v56 = vpop.f32.mrf.mxu0  ;;  %1387 = vmatmul.mubr.f32.vlgmr.msra.gmra.mxu0 %v804_v50 }
 0x354   :  { %v805_v57 = vmax.f32 %v797_v53, 0.0  ;;  %v772_v58 = vadd.f32 %v771_v46, %v666_v56  ;;  %v800_v17 = vadd.f32 %v968_v38, %v777_v54 }
 0x355   :  { %v1309_v20 = vpop.f32.mrf.mxu0 }
 0x356   :  { %v799_v22 = vadd.f32 %v968_v38, %v772_v58  ;;  %v787_v59 = vadd.f32 %v1353_v55, %v1309_v20  ;;  %1389 = vmatprep.mubr.f32.mxu0 %v805_v57  ;;  %v808_v30 = vmax.f32 %v800_v17, 0.0 }
 0x357   :  { %v676_v27 = vpop.f32.mrf.mxu0  ;;  %1390 = vmatmul.mubr.f32.gmra.mxu0 %v806_v15 }
 0x358   :  { %v807_v60 = vmax.f32 %v799_v22, 0.0  ;;  %v782_v61 = vadd.f32 %v781_v25, %v676_v27  ;;  %v802_v62 = vadd.f32 %v968_v38, %v787_v59 }
 0x35a   :  { %v801_v63 = vadd.f32 %v968_v38, %v782_v61  ;;  %1392 = vmatprep.mubr.f32.mxu0 %v807_v60  ;;  %v810_v1 = vmax.f32 %v802_v62, 0.0 }
 0x35b   :  { %1393 = vmatmul.mubr.f32.gmra.mxu0 %v808_v30 }
 0x35c   :  { %v809_v0 = vmax.f32 %v801_v63, 0.0 }
 0x35e   :  { %1395 = vmatprep.mubr.f32.mxu0 %v809_v0 }
 0x35f   :  { %1396 = vmatmul.mubr.f32.gmra.mxu0 %v810_v1 }
 0x413   :  { %v1388_v3 = vpop.f32.mrf.mxu0 }
 0x414   :  { %v905_v4 = vadd.f32 %v1388_v3, %v969_v2 }
 0x415   :  { %v899_v5 = vpop.f32.mrf.mxu0 }
 0x416   :  { %939 = vst [vmem:[%s1657_s4 + $0x8] sm:$0xff] %v905_v4  ;;  %v900_v6 = vadd.f32 %v969_v2, %v899_v5 }
 0x417   :  { %v1391_v7 = vpop.f32.mrf.mxu0 }
 0x418   :  { %938 = vst [vmem:[%s1657_s4] sm:$0xff] %v900_v6  ;;  %v915_v8 = vadd.f32 %v1391_v7, %v969_v2 }
 0x419   :  { %v909_v9 = vpop.f32.mrf.mxu0 }
 0x41a   :  { %941 = vst [vmem:[%s1657_s4 + $0x18] sm:$0xff] %v915_v8  ;;  %v910_v10 = vadd.f32 %v969_v2, %v909_v9 }
 0x41b   :  { %v1394_v11 = vpop.f32.mrf.mxu0 }
 0x41c   :  { %940 = vst [vmem:[%s1657_s4 + $0x10] sm:$0xff] %v910_v10  ;;  %v925_v12 = vadd.f32 %v1394_v11, %v969_v2 }
 0x41d   :  { %v919_v13 = vpop.f32.mrf.mxu0 }
 0x41e   :  { %943 = vst [vmem:[%s1657_s4 + $0x28] sm:$0xff] %v925_v12  ;;  %v920_v14 = vadd.f32 %v969_v2, %v919_v13 }
 0x41f   :  { %v1397_v16 = vpop.f32.mrf.mxu0 }
 0x420   :  { %942 = vst [vmem:[%s1657_s4 + $0x20] sm:$0xff] %v920_v14  ;;  %v935_v18 = vadd.f32 %v1397_v16, %v969_v2 }
 0x421   :  { %v929_v19 = vpop.f32.mrf.mxu0 }
 0x422   :  { %945 = vst [vmem:[%s1657_s4 + $0x38] sm:$0xff] %v935_v18  ;;  %v930_v21 = vadd.f32 %v969_v2, %v929_v19 }
 0x424   :  { %944 = vst [vmem:[%s1657_s4 + $0x30] sm:$0xff] %v930_v21 }
 0x425   :  { %950 = vsyncpa [#allocation3], 1 }

</bundles_post_ra>
